<compile_context>
chip_gen: v7x
topology: tpu7x:2x2x1
jax: 0.10.0
libtpu: 0.0.40
codegen_flags: <defaults>
</compile_context>

<pallas_src>
import functools

import jax
import jax.numpy as jnp
from jax import lax
from jax.experimental import pallas as pl
from jax.experimental.pallas import tpu as pltpu


def _default_block_kernel(x_ref, wt_ref, shift_ref, o_ref, *, B, H, KH):
    # x_ref    : (1, B*(H+KH-1), W*Cin)   stacked, height-haloed input slab (compute dtype)
    # wt_ref   : (KH*W*Cin, W*Cout)       block-Toeplitz conv weight, BN scale folded in
    # shift_ref: (1, W*Cout) f32          beta - mean * scale, tiled along W
    # o_ref    : (B, H, W*Cout)           lane-dense output slab
    hp = H + KH - 1
    w_cin = x_ref.shape[-1]
    m_acc = B * hp - (KH - 1)

    # Activation tile stays in the MXU compute dtype (no f32 round trip); kh row offsets
    # are plain sublane-offset slices of the already-loaded tile.
    xs = x_ref[0]                                            # (B*hp, W*Cin)
    lhs = jnp.concatenate([xs[kh:kh + m_acc, :] for kh in range(KH)],
                          axis=-1)                           # (m_acc, KH*W*Cin)

    # Single merged MXU matmul (K = KH*W*Cin), f32 accumulation.
    acc = jnp.dot(lhs, wt_ref[...], preferred_element_type=jnp.float32)

    # BN scale already folded into wt; epilogue is bias + ReLU in f32.
    out = jnp.maximum(acc + shift_ref[...], 0.0)

    # Valid H rows of each image in the block; the (KH-1) halo rows per image are waste.
    for b in range(B):                                       # static unroll
        o_ref[b] = out[b * hp:b * hp + H, :].astype(o_ref.dtype)


def _pick_images_per_step(n_images, requested):
    # Batch images per step to raise the MXU M dimension, but keep >= 2 grid steps when N
    # allows so both v7x TensorCores get work.  B must divide N.
    cap = max(1, min(requested, n_images // 2 if n_images >= 2 else n_images))
    for b in range(cap, 0, -1):
        if n_images % b == 0:
            return b
    return 1


def fold_conv_bn_params(conv_w, gamma, beta, run_mean, run_var, W, eps=1e-5,
                        compute_dtype=jnp.bfloat16):
    """Build fused conv/BN parameters ONCE (hoist out of the per-forward path).

    Returns:
      wt:      (KH*W*Cin, W*Cout) block-Toeplitz conv weight with the BN scale folded in,
               cast to `compute_dtype` (MXU operand).  The width "same" padding lives as
               zeros inside this matrix, so no width pad is ever materialized.
      shift_t: (1, W*Cout) f32 additive BN bias, tiled along W to match the lane layout.
    """
    Cout, Cin, KH, KW = conv_w.shape
    assert KH % 2 == 1 and KW % 2 == 1, "odd kernel ('same' padding) only"
    pad_w = (KW - 1) // 2

    scale = (gamma / jnp.sqrt(run_var + eps)).astype(jnp.float32)
    shift = (beta - run_mean * scale).astype(jnp.float32)

    # wt[kh, p*Cin+cin, j*Cout+cout] = w[cout,cin,kh,p-j+pad_w] * scale[cout], 0 outside.
    w_hwio = jnp.transpose(conv_w.astype(jnp.float32), (2, 3, 1, 0))    # (KH,KW,Cin,Cout)
    w_hwio = w_hwio * scale[None, None, None, :]                        # fold BN scale
    p = jnp.arange(W)[:, None]                                          # input column
    j = jnp.arange(W)[None, :]                                          # output column
    kw_idx = p - j + pad_w
    valid = (kw_idx >= 0) & (kw_idx < KW)
    wt = w_hwio[:, jnp.clip(kw_idx, 0, KW - 1), :, :]                   # (KH,W,W,Cin,Cout)
    wt = jnp.where(valid[None, :, :, None, None], wt, 0.0)
    wt = jnp.transpose(wt, (0, 1, 3, 2, 4)).reshape(KH * W * Cin, W * Cout)
    wt = wt.astype(compute_dtype)

    shift_t = jnp.tile(shift, W).reshape(1, W * Cout)
    return wt, shift_t


def default_block_apply(x_nchw, wt, shift_t, *, kernel_size=3, images_per_step=8,
                        compute_dtype=jnp.bfloat16, out_dtype=None):
    """x_nchw: (N, Cin, H, W); wt/shift_t from fold_conv_bn_params."""
    N, Cin, H, W = x_nchw.shape
    KH = kernel_size
    w_cin = W * Cin
    w_cout = shift_t.shape[-1]
    Cout = w_cout // W
    assert wt.shape == (KH * w_cin, w_cout)
    pad_h = (KH - 1) // 2
    hp = H + 2 * pad_h                  # == H + KH - 1 for "same" padding
    if out_dtype is None:
        out_dtype = x_nchw.dtype        # pass bf16 to halve writeback when the consumer allows
    # Fast path expects a lane-dense output width (multiple of 128); other widths are
    # still correct but fall back to masked partial stores.

    B = _pick_images_per_step(N, images_per_step)
    G = N // B

    # ---- glue (plain JAX; fuses into the one unavoidable NCHW->NHWC layout copy) -------
    # NCHW -> (N, H, W*Cin), pad only the height halo (width padding is inside wt's
    # Toeplitz zeros), cast to the MXU operand dtype, and stack B images per grid step.
    x_slab = jnp.transpose(x_nchw, (0, 2, 3, 1)).reshape(N, H, w_cin)
    x_slab = jnp.pad(x_slab, ((0, 0), (pad_h, pad_h), (0, 0))).astype(compute_dtype)
    x_slab = x_slab.reshape(G, B * hp, w_cin)

    kernel = functools.partial(_default_block_kernel, B=B, H=H, KH=KH)

    cb = jnp.dtype(compute_dtype).itemsize
    ob = jnp.dtype(out_dtype).itemsize
    est = (4 * (B * hp * w_cin * cb + B * H * w_cout * ob)
           + 2 * int(wt.size) * cb + (8 << 20))
    vmem_limit = int(min(64 << 20, max(32 << 20, est)))   # v7x physical VMEM is 64 MiB

    out_slab = pl.pallas_call(
        kernel,
        out_shape=jax.ShapeDtypeStruct((N, H, w_cout), out_dtype),
        grid_spec=pltpu.PrefetchScalarGridSpec(
            num_scalar_prefetch=0,
            grid=(G,),  # >= 2 parallel steps when N allows: feeds both v7x TensorCores
            in_specs=[
                pl.BlockSpec((1, B * hp, w_cin), lambda g: (g, 0, 0)),
                pl.BlockSpec((KH * w_cin, w_cout), lambda g: (0, 0)),   # resident weights
                pl.BlockSpec((1, w_cout), lambda g: (0, 0)),
            ],
            out_specs=pl.BlockSpec((B, H, w_cout), lambda g: (g, 0, 0)),
        ),
        compiler_params=pltpu.CompilerParams(
            dimension_semantics=("parallel",),
            vmem_limit_bytes=vmem_limit),
    )(x_slab, wt, shift_t)

    # (N, H, W*Cout) -> (N, H, W, Cout) is a free contiguous reshape; transpose back to
    # NCHW to match the PyTorch module boundary (drop if the surrounding model is NHWC).
    return jnp.transpose(out_slab.reshape(N, H, W, Cout), (0, 3, 1, 2))


def default_block_forward(x_nchw, conv_w, gamma, beta, run_mean, run_var, eps=1e-5,
                          compute_dtype=jnp.bfloat16, out_dtype=None, images_per_step=8):
    # NOTE: in real use, call fold_conv_bn_params once at init and cache the result;
    # it is inlined here only so the test script is self-contained.
    W = x_nchw.shape[-1]
    wt, shift_t = fold_conv_bn_params(conv_w, gamma, beta, run_mean, run_var, W,
                                      eps=eps, compute_dtype=compute_dtype)
    return default_block_apply(x_nchw, wt, shift_t, kernel_size=conv_w.shape[2],
                               images_per_step=images_per_step,
                               compute_dtype=compute_dtype, out_dtype=out_dtype)


def _reference(x, conv_w, gamma, beta, run_mean, run_var, eps=1e-5, quant_dtype=None):
    # BN scale folded into the conv weights BEFORE quantization, matching the kernel's
    # quantization point exactly (only summation order differs).
    s = gamma / jnp.sqrt(run_var + eps)
    w_folded = conv_w * s[:, None, None, None]
    shift = beta - run_mean * s
    xq, wq = x, w_folded
    if quant_dtype is not None:  # mimic bf16 MXU operands with f32 accumulation
        xq = xq.astype(quant_dtype)
        wq = wq.astype(quant_dtype)
    y = lax.conv_general_dilated(
        xq.astype(jnp.float32), wq.astype(jnp.float32),
        window_strides=(1, 1), padding=((1, 1), (1, 1)),
        dimension_numbers=("NCHW", "OIHW", "NCHW"))
    y = y + shift[None, :, None, None]
    return jnp.maximum(y, 0.0)


if __name__ == "__main__":
    key = jax.random.PRNGKey(0)
    k1, k2, k3, k4, k5, k6 = jax.random.split(key, 6)

    N, Cin, Cout, H, W = 2, 4, 8, 16, 16

    x = jax.random.normal(k1, (N, Cin, H, W), dtype=jnp.float32)
    conv_w = jax.random.normal(k2, (Cout, Cin, 3, 3), dtype=jnp.float32) * 0.1
    gamma = 1.0 + 0.1 * jax.random.normal(k3, (Cout,), dtype=jnp.float32)
    beta = 0.1 * jax.random.normal(k4, (Cout,), dtype=jnp.float32)
    run_mean = 0.1 * jax.random.normal(k5, (Cout,), dtype=jnp.float32)
    run_var = jax.random.uniform(k6, (Cout,), minval=0.5, maxval=1.5, dtype=jnp.float32)

    # bf16-MXU path (BN scale folded into the bf16 weights): compare against a reference
    # with the identical quantization point.
    out = jax.block_until_ready(
        default_block_forward(x, conv_w, gamma, beta, run_mean, run_var))
    ref = _reference(x, conv_w, gamma, beta, run_mean, run_var, quant_dtype=jnp.bfloat16)
    assert out.shape == (N, Cout, H, W)
    assert jnp.allclose(out, ref, atol=2e-3, rtol=2e-3), float(jnp.max(jnp.abs(out - ref)))

    # f32 operand path: matches the exact f32 reference up to summation order.
    out32 = jax.block_until_ready(default_block_forward(
        x, conv_w, gamma, beta, run_mean, run_var, compute_dtype=jnp.float32))
    ref32 = _reference(x, conv_w, gamma, beta, run_mean, run_var)
    assert jnp.allclose(out32, ref32, atol=1e-4, rtol=1e-4), \
        float(jnp.max(jnp.abs(out32 - ref32)))

    # Multi-image-per-step path (B > 1): exercises the stacked-slab merged matmul and the
    # per-image valid-row slicing out of the accumulator.
    N2 = 8
    x2 = jax.random.normal(jax.random.PRNGKey(1), (N2, Cin, H, W), dtype=jnp.float32)
    out_b = jax.block_until_ready(default_block_forward(
        x2, conv_w, gamma, beta, run_mean, run_var, images_per_step=4))
    ref_b = _reference(x2, conv_w, gamma, beta, run_mean, run_var, quant_dtype=jnp.bfloat16)
    assert out_b.shape == (N2, Cout, H, W)
    assert jnp.allclose(out_b, ref_b, atol=2e-3, rtol=2e-3), \
        float(jnp.max(jnp.abs(out_b - ref_b)))

    print("KERNEL_OK")
</pallas_src>

<mosaic_0001>
module attributes {stable_mosaic.version = 11 : i64} {
  func.func @_default_block_kernel(%arg0: i32, %arg1: memref<1x18x64xbf16, #tpu.memory_space<vmem>>, %arg2: memref<192x128xbf16, #tpu.memory_space<vmem>>, %arg3: memref<1x128xf32, #tpu.memory_space<vmem>>, %arg4: memref<1x16x128xf32, #tpu.memory_space<vmem>>) attributes {dimension_semantics = [#tpu.dimension_semantics<parallel>], iteration_bounds = array<i64: 2>, scalar_prefetch = 0 : i64, scratch_operands = 0 : i64, tpu.core_type = #tpu.core_type<tc>, window_params = [{transform_indices = @transform_0, window_bounds = array<i64: 1, 18, 64>}, {pipeline_mode = #tpu.pipeline_mode<synchronous>, transform_indices = @transform_1, window_bounds = array<i64: 192, 128>}, {pipeline_mode = #tpu.pipeline_mode<synchronous>, transform_indices = @transform_2, window_bounds = array<i64: 1, 128>}, {transform_indices = @transform_3, window_bounds = array<i64: 1, 16, 128>}]} {
    %c0 = arith.constant 0 : index
    %c0_0 = arith.constant 0 : index
    %c0_1 = arith.constant 0 : index
    %0 = vector.load %arg1[%c0, %c0_0, %c0_1] : memref<1x18x64xbf16, #tpu.memory_space<vmem>>, vector<1x18x64xbf16>
    %1 = vector.shape_cast %0 : vector<1x18x64xbf16> to vector<18x64xbf16>
    %2 = vector.extract_strided_slice %1 {offsets = [0, 0], sizes = [16, 64], strides = [1, 1]} : vector<18x64xbf16> to vector<16x64xbf16>
    %3 = vector.extract_strided_slice %1 {offsets = [1, 0], sizes = [16, 64], strides = [1, 1]} : vector<18x64xbf16> to vector<16x64xbf16>
    %4 = vector.extract_strided_slice %1 {offsets = [2, 0], sizes = [16, 64], strides = [1, 1]} : vector<18x64xbf16> to vector<16x64xbf16>
    %5 = tpu.concatenate %2, %3, %4 in 1 : vector<16x64xbf16>, vector<16x64xbf16>, vector<16x64xbf16> -> vector<16x192xbf16>
    %c0_2 = arith.constant 0 : index
    %c0_3 = arith.constant 0 : index
    %6 = vector.load %arg2[%c0_2, %c0_3] : memref<192x128xbf16, #tpu.memory_space<vmem>>, vector<192x128xbf16>
    %cst = arith.constant dense<0.000000e+00> : vector<16x128xf32>
    %7 = tpu.matmul %5, %6, %cst {dimension_numbers = #tpu.dot_dimension_numbers<[1], [0], [0], [1], [0, 0, 1, 1], [], []>} : vector<16x192xbf16>, vector<192x128xbf16>, vector<16x128xf32> -> vector<16x128xf32>
    %c0_4 = arith.constant 0 : index
    %c0_5 = arith.constant 0 : index
    %8 = vector.load %arg3[%c0_4, %c0_5] : memref<1x128xf32, #tpu.memory_space<vmem>>, vector<1x128xf32>
    %9 = vector.broadcast %8 : vector<1x128xf32> to vector<16x128xf32>
    %10 = arith.addf %7, %9 : vector<16x128xf32>
    %cst_6 = arith.constant 0.000000e+00 : f32
    %11 = vector.broadcast %cst_6 : f32 to vector<16x128xf32>
    %12 = arith.maximumf %10, %11 : vector<16x128xf32>
    %c0_7 = arith.constant 0 : index
    %c0_8 = arith.constant 0 : index
    %c0_9 = arith.constant 0 : index
    %13 = vector.load %arg4[%c0_7, %c0_8, %c0_9] : memref<1x16x128xf32, #tpu.memory_space<vmem>>, vector<1x16x128xf32>
    %14 = vector.shape_cast %13 : vector<1x16x128xf32> to vector<16x128xf32>
    %15 = vector.shape_cast %12 : vector<16x128xf32> to vector<1x16x128xf32>
    tpu.vector_store %arg4[%c0_7, %c0_8, %c0_9], %15 {strides = array<i32>} : memref<1x16x128xf32, #tpu.memory_space<vmem>>, vector<1x16x128xf32>,
    return
  }
  func.func @transform_0(%arg0: i32) -> (i32, i32, i32) {
    %c0_i32 = arith.constant 0 : i32
    %c0_i32_0 = arith.constant 0 : i32
    %c0_i32_1 = arith.constant 0 : i32
    return %arg0, %c0_i32, %c0_i32_0 : i32, i32, i32
  }
  func.func @transform_1(%arg0: i32) -> (i32, i32) {
    %c0_i32 = arith.constant 0 : i32
    %c0_i32_0 = arith.constant 0 : i32
    %c0_i32_1 = arith.constant 0 : i32
    return %c0_i32, %c0_i32_0 : i32, i32
  }
  func.func @transform_2(%arg0: i32) -> (i32, i32) {
    %c0_i32 = arith.constant 0 : i32
    %c0_i32_0 = arith.constant 0 : i32
    %c0_i32_1 = arith.constant 0 : i32
    return %c0_i32, %c0_i32_0 : i32, i32
  }
  func.func @transform_3(%arg0: i32) -> (i32, i32, i32) {
    %c0_i32 = arith.constant 0 : i32
    %c0_i32_0 = arith.constant 0 : i32
    %c0_i32_1 = arith.constant 0 : i32
    return %arg0, %c0_i32, %c0_i32_0 : i32, i32, i32
  }
}

</mosaic_0001>

<bundles_post_ra>
// kernel: tpu_custom_call.1
= control target key start
LH: loop header
LB: loop body
LE: loop exit
PB: predicated region body
PF: predicated region fallthrough
CT: control target
= control target key end

     0   :  { %8 = vsyncpa [#allocation3], 0  ;;  %s827_s0 = inlined_call_operand.vmem [shape: bf16[2,18,64], index: 0, kind: input, shape index: {}]   ;;  %s828_s1 = inlined_call_operand.hbm [shape: bf16[192,128], index: 1, kind: input, shape index: {}]   ;;  %s829_s2 = inlined_call_operand.vmem [shape: f32[1,128], index: 2, kind: input, shape index: {}]   ;;  %s830_s3 = inlined_call_operand.hbm [shape: f32[2,16,128], index: 3, kind: output, shape index: {}]  }
   0x1   :  { %9 = vsyncpa [#allocation4], 0 }
   0x2   :  { %11 = vsyncpa [#allocation4 + $0x1], 0  ;;  %s683_s12 = smov 0   ;;  %s685_s13 = smov 0  }
   0x3   :  { %s687_s14 = smov 0   ;;  %s689_s15 = smov 0  }
   0x4 LB: > { %s704_s16 = sadd.s32 4294967295, %s653_s15   ;;  %s458_s17 = sadd.s32 4294967294, %s653_s15   ;;  %s653_s15 = sphi %s689_s15, %s846_s15   ;;  %s649_s14 = sphi %s687_s14, %s845_s14   ;;  %s645_s13 = sphi %s685_s13, %s844_s13   ;;  %s641_s12 = sphi %s683_s12, %s843_s12  }
   0x5   : > { %s708_s18 = sadd.s32 1, %s653_s15   ;;  %s92_s19 = sadd.s32 1, %s649_s14 }
   0x6   : > { %s89_s20 = ssub.s32 %s653_s15, %s708_s18  ;;  %p102_p0 = scmp.ne.s32.totalorder %s649_s14, %s645_s13 }
   0x7   : > { %p90_p1 = scmp.eq.s32.totalorder %s89_s20, 0  ;;  %p103_p2 = scmp.eq.s32.totalorder %s704_s16, 1 }
   0x8   : > { %p108_p3 = scmp.ne.s32.totalorder %s645_s13, %s641_s12  ;;  %p109_p4 = scmp.eq.s32.totalorder %s458_s17, 1 }
   0x9   : > { %s719_s21 = scalar_select %p90_p1, %s649_s14, %s92_s19  }
   0xa   : > { %p721_p5 = por %p103_p2, %p102_p0  ;;  %p725_p6 = por %p109_p4, %p108_p3 }
   0xb   : > { %p459_p7 = scmp.ge.s32.totalorder %s653_s15, 1  ;;  %p116_p8 = scmp.lt.s32.totalorder %s653_s15, 3 }
   0xc   : > { %s834_s22 = scalar_select %p721_p5, 1, 0 }
   0xd   : > { %s835_s23 = scalar_select %p725_p6, 1, 0 }
   0xe   : > { %p831_p9 = scmp.eq.s32.totalorder %s704_s16, 0  ;;  %p732_p10 = pnand %p459_p7, %p116_p8 }
   0xf   : > { %s655_s25 = smov [#allocation2]   ;;  %s559_s30 = scalar_lea.hbm %s828_s1, 1536 }
  0x10   : > { %s836_s24 = scalar_select %p732_p10, 1, 0 }
  0x11   : > { %s128_s26 = sshll.u32 %s655_s25, 4  ;;  %p495_p11 = pneg %p732_p10  ;;  %s129_s26 = int_to_ptr.vmem [resolvable:$true] %s128_s26 }
  0x12   : > { %p560_p13 = scmp.ne.s32.totalorder %s828_s1, %s559_s30  ;;  %p566_p3 = scmp.lt.u32.totalorder %s559_s30, %s828_s1 }
  0x13   : > { %p740_p12 = pnand %p831_p9, %p495_p11 }
  0x15   : > { %p561_p0 = pneg %p740_p12 }
  0x17   : > { %p562_p1 = pnand %p561_p0, %p560_p13 }
  0x19   : > { %p563_p2 = pneg %p562_p1 }
  0x1b   : > { %p568_p4 = pnand %p566_p3, %p563_p2 }
  0x1d   : > { %571 = shalt.err (!%p568_p4)
}
  0x1e   : > { %s572_s8 = scalar_lea.vmem %s129_s26, 1536  ;;  %p580_p9 = scmp.lt.s32.totalorder %s129_s26, %s129_s26 }
  0x1f   : > { %p573_p7 = scmp.ne.s32.totalorder %s129_s26, %s572_s8  ;;  %p581_p6 = scmp.lt.s32.totalorder %s572_s8, %s572_s8 }
  0x21   : > { %p575_p8 = pnand %p573_p7, %p561_p0  ;;  %p582_p5 = por %p581_p6, %p580_p9 }
  0x23   : > { %p576_p11 = pneg %p575_p8 }
  0x25   : > { %p583_p10 = pnand %p582_p5, %p576_p11 }
  0x27   : > { %586 = shalt.err (!%p583_p10)
}
  0x28   : > { %s656_s9 = smov 64   ;;  %s657_s10 = smov 4  }
  0x29   : > { %498 = dma.hbm_to_vmem [thread:$0]  (!%p740_p12), %s828_s1, 1536, %s129_s26, [#allocation3], %s656_s9, %s656_s9, %s657_s10  }
  0x2a   : > { %p838_p13 = scmp.ne.s32.totalorder %s836_s24, 0 }
  0x2b   : > { %p839_p1 = scmp.eq.s32.totalorder (!%p838_p13), %s704_s16, 0 }
  0x2c   : > { %155 = sbr.rel (%p838_p13) target bundleno = 416 (0x1a0), region = 32 }
  0x33   : > { %632 = dma.done.wait (%p839_p1), [#allocation3], 1536   ;;  %p840_p0 = pmov %p839_p1 }
  0x34   : > { %p179_p5 = scmp.lt.s32.totalorder %s704_s16, 1  ;;  %v658_v0 = vmov 0   ;;  %vm196_vm0 = vsmask.f32 7424  ;;  %v547_v3 = vld [vmem:[#allocation2] sm:$0xff]   ;;  %vm211_vm1 = vcmask 1046528  }
  0x35   : > { %634 = vsyncadd (%p840_p0), [#allocation3], 4294965760  ;;  %325 = vmatprep.subr.bf16.mxu0 %v658_v0  ;;  %v548_v7 = vld [vmem:[#allocation2 + $0x8] sm:$0xff]   ;;  %vm215_vm2 = vcmask 523264   ;;  %v549_v13 = vld [vmem:[#allocation2 + $0x10] sm:$0xff]   ;;  %s659_s24 = smov 64  }
  0x36   : > { %s180_s19 = scalar_select %p179_p5, %s704_s16, 1  ;;  %326 = vmatpush1.bf16.msra.mxu0 %v547_v3  ;;  %v550_v16 = vld [vmem:[#allocation2 + $0x18] sm:$0xff]   ;;  %v551_v17 = vld [vmem:[#allocation2 + $0x20] sm:$0xff]   ;;  %v552_v18 = vld [vmem:[#allocation2 + $0x28] sm:$0xff]  }
  0x37   : > { %327 = vmatprep.subr.bf16.mxu0 %v658_v0  ;;  %v553_v19 = vld [vmem:[#allocation2 + $0x30] sm:$0xff]   ;;  %v554_v20 = vld [vmem:[#allocation2 + $0x38] sm:$0xff]   ;;  %v555_v21 = vld [vmem:[#allocation2 + $0x40] sm:$0xff]   ;;  %s176_s28 = sand.u32 1, %s645_s13   ;;  %s487_s7 = sshll.u32 %s704_s16, 8 }
  0x38   : > { %s488_s20 = smul.u32 12, %s180_s19  ;;  %v556_v22 = vld [vmem:[#allocation2 + $0x48] sm:$0xff]   ;;  %v557_v23 = vld [vmem:[#allocation2 + $0x50] sm:$0xff]   ;;  %v558_v24 = vld [vmem:[#allocation2 + $0x58] sm:$0xff]   ;;  %s464_s29 = sshll.u32 %s176_s28, 4 }
  0x39   : > { %v468_v27 = vld [vmem:[%s829_s2] ss:$0 sm:$0xff]  ;;  %s178_s5 = scalar_lea.vmem [#allocation5], %s464_s29  ;;  %s784_s10 = scalar_lea.hbm %s830_s3, %s487_s7 }
  0x3a   : > { %s183_s26 = scalar_lea.vmem %s827_s0, %s488_s20  ;;  %328 = vmatpush1.bf16.msra.mxu0 %v548_v7  ;;  %s384_s6 = sshll.u32 %s178_s5, 4  ;;  %s779_s6 = int_to_ptr.vmem [resolvable:$true] %s384_s6 }
  0x3b   : > { %v545_v1 = vld [vmem:[%s183_s26] sm:$0xff]   ;;  %v546_v2 = vld [vmem:[%s183_s26 + $0x8] ss:$0 sps:$4 sm:$0x11]   ;;  %329 = vmatprep.subr.bf16.mxu0 %v658_v0  ;;  %s786_s11 = scalar_lea.sflag [#allocation4], %s176_s28  ;;  %s587_s16 = scalar_lea.vmem %s779_s6, 256 }
  0x3c   : > { %v198_v4 = vshrl.u32 %v545_v1, 16  ;;  %v200_v5 = vshll.u32 %v545_v1, 16  ;;  %v205_v6 = vshll.u32 %v546_v2, 16  ;;  %v212_v8 = vrot.slane %v545_v1, 1  ;;  %p588_p6 = scmp.ne.s32.totalorder %s779_s6, %s587_s16  ;;  %p841_p9 = scmp.ne.s32.totalorder %s834_s22, 0 }
  0x3d   : > { %v213_v11 = vrot.slane %v546_v2, 1  ;;  %s660_s17 = smov [#allocation5]  }
  0x3e   : > { %v202_v9 = vrot.slane %v200_v5, 1  ;;  %v207_v10 = vrot.slane %v205_v6, 1  ;;  %330 = vmatpush1.bf16.msra.mxu0 %v549_v13  ;;  %p589_p10 = pnand %p588_p6, %p841_p9  ;;  %s591_s19 = sshll.u32 %s660_s17, 4  ;;  %s592_s19 = int_to_ptr.vmem [resolvable:$false] %s591_s19 }
  0x3f   : > { %v214_v14 = vsel %vm211_vm1, %v212_v8, %v213_v11  ;;  %331 = vmatprep.subr.bf16.mxu0 %v658_v0  ;;  %s593_s20 = scalar_lea.vmem %s592_s19, 512  ;;  %p594_p2 = scmp.lt.s32.totalorder %s779_s6, %s592_s19 }
  0x40   : > { %v203_v12 = vor.u32 %v202_v9, %v198_v4  ;;  %481 = vmatprep.mubr.msk.bf16.mxu0 %vm215_vm2, %v214_v14  ;;  %p590_p12 = pneg %p589_p10  ;;  %p595_p3 = scmp.lt.s32.totalorder %s593_s20, %s587_s16 }
  0x42   : > { %v208_v15 = vsel %vm196_vm0, %v203_v12, %v207_v10  ;;  %332 = vmatpush1.bf16.msra.mxu0 %v550_v16  ;;  %p596_p4 = por %p595_p3, %p594_p2 }
  0x43   : > { %209 = vrot.lane.b32.xlu0 %v208_v15, %s659_s24  ;;  %333 = vmatprep.subr.bf16.mxu0 %v658_v0 }
  0x44   : > { %p597_p7 = pnand %p596_p4, %p590_p12 }
  0x46   : > { %334 = vmatpush1.bf16.msra.mxu0 %v551_v17 }
  0x47   : > { %335 = vmatprep.subr.bf16.mxu0 %v658_v0 }
  0x4a   : > { %336 = vmatpush1.bf16.msra.mxu0 %v552_v18 }
  0x4b   : > { %337 = vmatprep.subr.bf16.mxu0 %v658_v0 }
  0x4e   : > { %338 = vmatpush1.bf16.msra.mxu0 %v553_v19 }
  0x4f   : > { %339 = vmatprep.subr.bf16.mxu0 %v658_v0 }
  0x52   : > { %340 = vmatpush1.bf16.msra.mxu0 %v554_v20 }
  0x53   : > { %341 = vmatprep.subr.bf16.mxu0 %v658_v0 }
  0x56   : > { %342 = vmatpush1.bf16.msra.mxu0 %v555_v21 }
  0x57   : > { %343 = vmatprep.subr.bf16.mxu0 %v658_v0 }
  0x5a   : > { %344 = vmatpush1.bf16.msra.mxu0 %v556_v22 }
  0x5b   : > { %345 = vmatprep.subr.bf16.mxu0 %v658_v0 }
  0x5e   : > { %346 = vmatpush1.bf16.msra.mxu0 %v557_v23 }
  0x5f   : > { %347 = vmatprep.subr.bf16.mxu0 %v658_v0 }
  0x62   : > { %348 = vmatpush1.bf16.msra.mxu0 %v558_v24 }
  0xb5   : > { %v210_v25 = vpop.permute.xlu0 %209 }
  0xb6   : > { %v217_v26 = vsel %vm215_vm2, %v545_v1, %v210_v25 }
  0xb7   : > { %358 = vmatmul.mubr.bf16.vlgmr.msra.gmra.mrb[0].mxu0 %v217_v26 }
 0x18a   : > { %v359_v28 = vpop.f32.mrb[0].mxu0 }
 0x18b   : > { %v360_v29 = vadd.f32 %v468_v27, %v359_v28  ;;  %v361_v30 = vpop.f32.mrb[1].mxu0 }
 0x18c   : > { %v362_v31 = vpop.f32.mrb[2].mxu0 }
 0x18d   : > { %v366_v32 = vmax.f32 %v360_v29, 0.0  ;;  %v363_v33 = vadd.f32 %v468_v27, %v362_v31  ;;  %v364_v34 = vpop.f32.mrb[3].mxu0 }
 0x18f   : > { %368 = vst [vmem:[%s178_s5] sm:$0xff] %v366_v32  ;;  %v367_v35 = vmax.f32 %v363_v33, 0.0 }
 0x191   : > { %369 = vst [vmem:[%s178_s5 + $0x8] sm:$0xff] %v367_v35 }
 0x192   : > { %600 = shalt.err (!%p597_p7)
}
 0x193   : > { %s601_s25 = scalar_lea.hbm %s784_s10, 256  ;;  %s605_s24 = scalar_lea.hbm %s830_s3, 512 }
 0x194   : > { %p602_p8 = scmp.ne.s32.totalorder %s784_s10, %s601_s25  ;;  %p606_p1 = scmp.lt.u32.totalorder %s784_s10, %s830_s3 }
 0x195   : > { %p607_p0 = scmp.lt.u32.totalorder %s605_s24, %s601_s25  ;;  %p609_p6 = scmp.lt.u32.totalorder %s601_s25, %s784_s10 }
 0x196   : > { %p603_p11 = pnand %p602_p8, %p841_p9 }
 0x197   : > { %p608_p5 = por %p607_p0, %p606_p1 }
 0x198   : > { %p604_p13 = pneg %p603_p11 }
 0x199   : > { %p610_p10 = por %p609_p6, %p608_p5 }
 0x19b   : > { %p611_p12 = pnand %p610_p10, %p604_p13 }
 0x19d   : > { %614 = shalt.err (!%p611_p12)
}
 0x19e   : > { %s661_s30 = smov 128   ;;  %s662_s4 = smov 8  }
 0x19f   : > { %493 = dma.vmem_to_hbm [thread:$0]  (%p841_p9), %s779_s6, 256, %s784_s10, %s786_s11, %s661_s30, %s661_s30, %s662_s4  }
 0x1a0 PF: > { %p505_p2 = scmp.ge.s32.totalorder %s653_s15, 2  ;;  %s399_s5 = sand.u32 1, %s641_s12  }
 0x1a1   : > { %p842_p3 = scmp.ne.s32.totalorder %s835_s23, 0  ;;  %s400_s7 = scalar_lea.sflag [#allocation4], %s399_s5 }
 0x1a3   : > { %p500_p4 = pnand %p505_p2, %p842_p3 }
 0x1a5   : > { %636 = dma.done.wait (!%p500_p4), %s400_s7, 256  }
 0x1a6   : > { %638 = vsyncadd (!%p500_p4), %s400_s7, 4294967040  ;;  %p14_p7 = scmp.ge.s32.totalorder %s708_s18, 4   ;;  %s843_s12 = smov %s645_s13 }
 0x1a7   : > { %s844_s13 = smov %s649_s14  ;;  %s845_s14 = smov %s719_s21 }
 0x1a8   : > { %s846_s15 = smov %s708_s18  ;;  %16 = sbr.rel (!%p14_p7) target bundleno = 4 (0x4), region = 72 }
 0x1af   :  { %405 = vsyncpa [#allocation3], 1 }
 0x1b0   :  { %407 = vsyncpa [#allocation3 + $0x1], 1 }
 0x1b1   :  { %408 = vsyncpa [#allocation4], 1 }
 0x1b2   :  { %410 = vsyncpa [#allocation4 + $0x1], 1 }

</bundles_post_ra>
